<compile_context>
chip_gen: v6e
topology: v6e:2x2x1
jax: 0.10.0
libtpu: 0.0.40
codegen_flags: <defaults>
</compile_context>

<pallas_src>
import functools

import jax
import jax.numpy as jnp
from jax.experimental import pallas as pl
from jax.experimental.pallas import tpu as pltpu


def _user_emb_kernel(B, C, V_pad, D, idx_ref, tbl_ref, out_ref):
    # idx_ref: SMEM (B*C,)       int32   -- scalar-prefetched feature indices
    # tbl_ref: VMEM (C*V_pad, D) float32 -- per-column tables stacked on rows
    # out_ref: VMEM (B, C*D)     float32 -- concatenated embeddings
    for b in range(B):                      # B, C tiny & static: fully unrolled
        for c in range(C):
            row = c * V_pad + idx_ref[b * C + c]          # dynamic table row
            out_ref[pl.ds(b, 1), pl.ds(c * D, D)] = tbl_ref[pl.ds(row, 1), :]


def melu_user_init(per_column_tables):
    """Stack per-column (V_c, D) tables into one (C*V_pad, D) f32 array.

    Parameter-only: run ONCE at model init, NOT in the per-call path."""
    V_pad = max(((t.shape[0] + 7) // 8) * 8 for t in per_column_tables)
    blocks = [
        jnp.pad(t.astype(jnp.float32), ((0, V_pad - t.shape[0]), (0, 0)))
        for t in per_column_tables
    ]
    return jnp.concatenate(blocks, axis=0)                 # (C*V_pad, D)


def melu_user_embed(users, stacked_tbl):
    """users: (B, C) int ; stacked_tbl: (C*V_pad, D) f32 -> (B, C*D) f32."""
    B, C = users.shape
    CV, D = stacked_tbl.shape
    assert CV % C == 0, "stacked table rows must be C * V_pad"
    V_pad = CV // C

    kernel = functools.partial(_user_emb_kernel, B, C, V_pad, D)
    return pl.pallas_call(
        kernel,
        out_shape=jax.ShapeDtypeStruct((B, C * D), stacked_tbl.dtype),
        grid_spec=pltpu.PrefetchScalarGridSpec(
            num_scalar_prefetch=1,          # flat indices land in SMEM
            grid=(1,),                      # single step: everything resident
            in_specs=[pl.BlockSpec((CV, D), lambda i, idx: (0, 0))],
            out_specs=pl.BlockSpec((B, C * D), lambda i, idx: (0, 0)),
        ),
    )(users.reshape(-1).astype(jnp.int32), stacked_tbl)


if __name__ == "__main__":
    key = jax.random.PRNGKey(0)

    # Synthetic MeLU-style user features: gender / age / occupation / zip-bucket
    vocab_sizes = [2, 7, 21, 30]     # per-column num_embeddings (features_max_value)
    embedding_dim = 32
    batch = 8
    num_cols = len(vocab_sizes)

    # Deterministic parameter init (PyTorch nn.Embedding default is N(0,1)).
    tkeys = jax.random.split(key, num_cols + 1)
    per_col_tables = [
        jax.random.normal(tkeys[i], (v, embedding_dim), dtype=jnp.float32)
        for i, v in enumerate(vocab_sizes)
    ]
    # Done once at "model init": stacked, sublane-padded table.
    stacked_tbl = melu_user_init(per_col_tables)           # (C*V_pad, D)

    # Deterministic input indices, each column bounded by its vocab size.
    ikeys = jax.random.split(tkeys[-1], num_cols)
    cols = [jax.random.randint(ikeys[i], (batch,), 0, vocab_sizes[i], dtype=jnp.int32)
            for i in range(num_cols)]
    users = jnp.stack(cols, axis=1)                        # (B, C) int32

    out = melu_user_embed(users, stacked_tbl)
    out = jax.block_until_ready(out)

    # Pure-JAX reference (embedding lookups + concat).
    ref = jnp.concatenate(
        [jnp.take(per_col_tables[i], users[:, i], axis=0) for i in range(num_cols)],
        axis=1)
    assert out.shape == (batch, num_cols * embedding_dim)
    assert jnp.array_equal(out, ref), "mismatch vs reference"

    print("KERNEL_OK")
</pallas_src>

<mosaic_0001>
module attributes {stable_mosaic.version = 11 : i64} {
  func.func @_user_emb_kernel(%arg0: i32, %arg1: memref<32xi32, #tpu.memory_space<smem>>, %arg2: memref<128x32xf32, #tpu.memory_space<vmem>>, %arg3: memref<8x128xf32, #tpu.memory_space<vmem>>) attributes {dimension_semantics = [#tpu.dimension_semantics<arbitrary>], iteration_bounds = array<i64: 1>, scalar_prefetch = 1 : i64, scratch_operands = 0 : i64, tpu.core_type = #tpu.core_type<tc>, window_params = [{pipeline_mode = #tpu.pipeline_mode<synchronous>, transform_indices = @transform_0, window_bounds = array<i64: 128, 32>}, {pipeline_mode = #tpu.pipeline_mode<synchronous>, transform_indices = @transform_1, window_bounds = array<i64: 8, 128>}]} {
    %c0 = arith.constant 0 : index
    %0 = memref.load %arg1[%c0] : memref<32xi32, #tpu.memory_space<smem>>
    %c0_i32 = arith.constant 0 : i32
    %1 = arith.addi %c0_i32, %0 : i32
    %2 = arith.index_cast %1 : i32 to index
    %c0_0 = arith.constant 0 : index
    %3 = vector.load %arg2[%2, %c0_0] : memref<128x32xf32, #tpu.memory_space<vmem>>, vector<1x32xf32>
    %c0_1 = arith.constant 0 : index
    %c0_2 = arith.constant 0 : index
    %4 = vector.load %arg3[%c0_1, %c0_2] : memref<8x128xf32, #tpu.memory_space<vmem>>, vector<1x32xf32>
    tpu.vector_store %arg3[%c0_1, %c0_2], %3 {strides = array<i32>} : memref<8x128xf32, #tpu.memory_space<vmem>>, vector<1x32xf32>,
    %c1 = arith.constant 1 : index
    %5 = memref.load %arg1[%c1] : memref<32xi32, #tpu.memory_space<smem>>
    %c32_i32 = arith.constant 32 : i32
    %6 = arith.addi %c32_i32, %5 : i32
    %7 = arith.index_cast %6 : i32 to index
    %c0_3 = arith.constant 0 : index
    %8 = vector.load %arg2[%7, %c0_3] : memref<128x32xf32, #tpu.memory_space<vmem>>, vector<1x32xf32>
    %c0_4 = arith.constant 0 : index
    %c32 = arith.constant 32 : index
    %9 = vector.load %arg3[%c0_4, %c32] : memref<8x128xf32, #tpu.memory_space<vmem>>, vector<1x32xf32>
    tpu.vector_store %arg3[%c0_4, %c32], %8 {strides = array<i32>} : memref<8x128xf32, #tpu.memory_space<vmem>>, vector<1x32xf32>,
    %c2 = arith.constant 2 : index
    %10 = memref.load %arg1[%c2] : memref<32xi32, #tpu.memory_space<smem>>
    %c64_i32 = arith.constant 64 : i32
    %11 = arith.addi %c64_i32, %10 : i32
    %12 = arith.index_cast %11 : i32 to index
    %c0_5 = arith.constant 0 : index
    %13 = vector.load %arg2[%12, %c0_5] : memref<128x32xf32, #tpu.memory_space<vmem>>, vector<1x32xf32>
    %c0_6 = arith.constant 0 : index
    %c64 = arith.constant 64 : index
    %14 = vector.load %arg3[%c0_6, %c64] : memref<8x128xf32, #tpu.memory_space<vmem>>, vector<1x32xf32>
    tpu.vector_store %arg3[%c0_6, %c64], %13 {strides = array<i32>} : memref<8x128xf32, #tpu.memory_space<vmem>>, vector<1x32xf32>,
    %c3 = arith.constant 3 : index
    %15 = memref.load %arg1[%c3] : memref<32xi32, #tpu.memory_space<smem>>
    %c96_i32 = arith.constant 96 : i32
    %16 = arith.addi %c96_i32, %15 : i32
    %17 = arith.index_cast %16 : i32 to index
    %c0_7 = arith.constant 0 : index
    %18 = vector.load %arg2[%17, %c0_7] : memref<128x32xf32, #tpu.memory_space<vmem>>, vector<1x32xf32>
    %c0_8 = arith.constant 0 : index
    %c96 = arith.constant 96 : index
    %19 = vector.load %arg3[%c0_8, %c96] : memref<8x128xf32, #tpu.memory_space<vmem>>, vector<1x32xf32>
    tpu.vector_store %arg3[%c0_8, %c96], %18 {strides = array<i32>} : memref<8x128xf32, #tpu.memory_space<vmem>>, vector<1x32xf32>,
    %c4 = arith.constant 4 : index
    %20 = memref.load %arg1[%c4] : memref<32xi32, #tpu.memory_space<smem>>
    %c0_i32_9 = arith.constant 0 : i32
    %21 = arith.addi %c0_i32_9, %20 : i32
    %22 = arith.index_cast %21 : i32 to index
    %c0_10 = arith.constant 0 : index
    %23 = vector.load %arg2[%22, %c0_10] : memref<128x32xf32, #tpu.memory_space<vmem>>, vector<1x32xf32>
    %c1_11 = arith.constant 1 : index
    %c0_12 = arith.constant 0 : index
    %24 = vector.load %arg3[%c1_11, %c0_12] : memref<8x128xf32, #tpu.memory_space<vmem>>, vector<1x32xf32>
    tpu.vector_store %arg3[%c1_11, %c0_12], %23 {strides = array<i32>} : memref<8x128xf32, #tpu.memory_space<vmem>>, vector<1x32xf32>,
    %c5 = arith.constant 5 : index
    %25 = memref.load %arg1[%c5] : memref<32xi32, #tpu.memory_space<smem>>
    %c32_i32_13 = arith.constant 32 : i32
    %26 = arith.addi %c32_i32_13, %25 : i32
    %27 = arith.index_cast %26 : i32 to index
    %c0_14 = arith.constant 0 : index
    %28 = vector.load %arg2[%27, %c0_14] : memref<128x32xf32, #tpu.memory_space<vmem>>, vector<1x32xf32>
    %c1_15 = arith.constant 1 : index
    %c32_16 = arith.constant 32 : index
    %29 = vector.load %arg3[%c1_15, %c32_16] : memref<8x128xf32, #tpu.memory_space<vmem>>, vector<1x32xf32>
    tpu.vector_store %arg3[%c1_15, %c32_16], %28 {strides = array<i32>} : memref<8x128xf32, #tpu.memory_space<vmem>>, vector<1x32xf32>,
    %c6 = arith.constant 6 : index
    %30 = memref.load %arg1[%c6] : memref<32xi32, #tpu.memory_space<smem>>
    %c64_i32_17 = arith.constant 64 : i32
    %31 = arith.addi %c64_i32_17, %30 : i32
    %32 = arith.index_cast %31 : i32 to index
    %c0_18 = arith.constant 0 : index
    %33 = vector.load %arg2[%32, %c0_18] : memref<128x32xf32, #tpu.memory_space<vmem>>, vector<1x32xf32>
    %c1_19 = arith.constant 1 : index
    %c64_20 = arith.constant 64 : index
    %34 = vector.load %arg3[%c1_19, %c64_20] : memref<8x128xf32, #tpu.memory_space<vmem>>, vector<1x32xf32>
    tpu.vector_store %arg3[%c1_19, %c64_20], %33 {strides = array<i32>} : memref<8x128xf32, #tpu.memory_space<vmem>>, vector<1x32xf32>,
    %c7 = arith.constant 7 : index
    %35 = memref.load %arg1[%c7] : memref<32xi32, #tpu.memory_space<smem>>
    %c96_i32_21 = arith.constant 96 : i32
    %36 = arith.addi %c96_i32_21, %35 : i32
    %37 = arith.index_cast %36 : i32 to index
    %c0_22 = arith.constant 0 : index
    %38 = vector.load %arg2[%37, %c0_22] : memref<128x32xf32, #tpu.memory_space<vmem>>, vector<1x32xf32>
    %c1_23 = arith.constant 1 : index
    %c96_24 = arith.constant 96 : index
    %39 = vector.load %arg3[%c1_23, %c96_24] : memref<8x128xf32, #tpu.memory_space<vmem>>, vector<1x32xf32>
    tpu.vector_store %arg3[%c1_23, %c96_24], %38 {strides = array<i32>} : memref<8x128xf32, #tpu.memory_space<vmem>>, vector<1x32xf32>,
    %c8 = arith.constant 8 : index
    %40 = memref.load %arg1[%c8] : memref<32xi32, #tpu.memory_space<smem>>
    %c0_i32_25 = arith.constant 0 : i32
    %41 = arith.addi %c0_i32_25, %40 : i32
    %42 = arith.index_cast %41 : i32 to index
    %c0_26 = arith.constant 0 : index
    %43 = vector.load %arg2[%42, %c0_26] : memref<128x32xf32, #tpu.memory_space<vmem>>, vector<1x32xf32>
    %c2_27 = arith.constant 2 : index
    %c0_28 = arith.constant 0 : index
    %44 = vector.load %arg3[%c2_27, %c0_28] : memref<8x128xf32, #tpu.memory_space<vmem>>, vector<1x32xf32>
    tpu.vector_store %arg3[%c2_27, %c0_28], %43 {strides = array<i32>} : memref<8x128xf32, #tpu.memory_space<vmem>>, vector<1x32xf32>,
    %c9 = arith.constant 9 : index
    %45 = memref.load %arg1[%c9] : memref<32xi32, #tpu.memory_space<smem>>
    %c32_i32_29 = arith.constant 32 : i32
    %46 = arith.addi %c32_i32_29, %45 : i32
    %47 = arith.index_cast %46 : i32 to index
    %c0_30 = arith.constant 0 : index
    %48 = vector.load %arg2[%47, %c0_30] : memref<128x32xf32, #tpu.memory_space<vmem>>, vector<1x32xf32>
    %c2_31 = arith.constant 2 : index
    %c32_32 = arith.constant 32 : index
    %49 = vector.load %arg3[%c2_31, %c32_32] : memref<8x128xf32, #tpu.memory_space<vmem>>, vector<1x32xf32>
    tpu.vector_store %arg3[%c2_31, %c32_32], %48 {strides = array<i32>} : memref<8x128xf32, #tpu.memory_space<vmem>>, vector<1x32xf32>,
    %c10 = arith.constant 10 : index
    %50 = memref.load %arg1[%c10] : memref<32xi32, #tpu.memory_space<smem>>
    %c64_i32_33 = arith.constant 64 : i32
    %51 = arith.addi %c64_i32_33, %50 : i32
    %52 = arith.index_cast %51 : i32 to index
    %c0_34 = arith.constant 0 : index
    %53 = vector.load %arg2[%52, %c0_34] : memref<128x32xf32, #tpu.memory_space<vmem>>, vector<1x32xf32>
    %c2_35 = arith.constant 2 : index
    %c64_36 = arith.constant 64 : index
    %54 = vector.load %arg3[%c2_35, %c64_36] : memref<8x128xf32, #tpu.memory_space<vmem>>, vector<1x32xf32>
    tpu.vector_store %arg3[%c2_35, %c64_36], %53 {strides = array<i32>} : memref<8x128xf32, #tpu.memory_space<vmem>>, vector<1x32xf32>,
    %c11 = arith.constant 11 : index
    %55 = memref.load %arg1[%c11] : memref<32xi32, #tpu.memory_space<smem>>
    %c96_i32_37 = arith.constant 96 : i32
    %56 = arith.addi %c96_i32_37, %55 : i32
    %57 = arith.index_cast %56 : i32 to index
    %c0_38 = arith.constant 0 : index
    %58 = vector.load %arg2[%57, %c0_38] : memref<128x32xf32, #tpu.memory_space<vmem>>, vector<1x32xf32>
    %c2_39 = arith.constant 2 : index
    %c96_40 = arith.constant 96 : index
    %59 = vector.load %arg3[%c2_39, %c96_40] : memref<8x128xf32, #tpu.memory_space<vmem>>, vector<1x32xf32>
    tpu.vector_store %arg3[%c2_39, %c96_40], %58 {strides = array<i32>} : memref<8x128xf32, #tpu.memory_space<vmem>>, vector<1x32xf32>,
    %c12 = arith.constant 12 : index
    %60 = memref.load %arg1[%c12] : memref<32xi32, #tpu.memory_space<smem>>
    %c0_i32_41 = arith.constant 0 : i32
    %61 = arith.addi %c0_i32_41, %60 : i32
    %62 = arith.index_cast %61 : i32 to index
    %c0_42 = arith.constant 0 : index
    %63 = vector.load %arg2[%62, %c0_42] : memref<128x32xf32, #tpu.memory_space<vmem>>, vector<1x32xf32>
    %c3_43 = arith.constant 3 : index
    %c0_44 = arith.constant 0 : index
    %64 = vector.load %arg3[%c3_43, %c0_44] : memref<8x128xf32, #tpu.memory_space<vmem>>, vector<1x32xf32>
    tpu.vector_store %arg3[%c3_43, %c0_44], %63 {strides = array<i32>} : memref<8x128xf32, #tpu.memory_space<vmem>>, vector<1x32xf32>,
    %c13 = arith.constant 13 : index
    %65 = memref.load %arg1[%c13] : memref<32xi32, #tpu.memory_space<smem>>
    %c32_i32_45 = arith.constant 32 : i32
    %66 = arith.addi %c32_i32_45, %65 : i32
    %67 = arith.index_cast %66 : i32 to index
    %c0_46 = arith.constant 0 : index
    %68 = vector.load %arg2[%67, %c0_46] : memref<128x32xf32, #tpu.memory_space<vmem>>, vector<1x32xf32>
    %c3_47 = arith.constant 3 : index
    %c32_48 = arith.constant 32 : index
    %69 = vector.load %arg3[%c3_47, %c32_48] : memref<8x128xf32, #tpu.memory_space<vmem>>, vector<1x32xf32>
    tpu.vector_store %arg3[%c3_47, %c32_48], %68 {strides = array<i32>} : memref<8x128xf32, #tpu.memory_space<vmem>>, vector<1x32xf32>,
    %c14 = arith.constant 14 : index
    %70 = memref.load %arg1[%c14] : memref<32xi32, #tpu.memory_space<smem>>
    %c64_i32_49 = arith.constant 64 : i32
    %71 = arith.addi %c64_i32_49, %70 : i32
    %72 = arith.index_cast %71 : i32 to index
    %c0_50 = arith.constant 0 : index
    %73 = vector.load %arg2[%72, %c0_50] : memref<128x32xf32, #tpu.memory_space<vmem>>, vector<1x32xf32>
    %c3_51 = arith.constant 3 : index
    %c64_52 = arith.constant 64 : index
    %74 = vector.load %arg3[%c3_51, %c64_52] : memref<8x128xf32, #tpu.memory_space<vmem>>, vector<1x32xf32>
    tpu.vector_store %arg3[%c3_51, %c64_52], %73 {strides = array<i32>} : memref<8x128xf32, #tpu.memory_space<vmem>>, vector<1x32xf32>,
    %c15 = arith.constant 15 : index
    %75 = memref.load %arg1[%c15] : memref<32xi32, #tpu.memory_space<smem>>
    %c96_i32_53 = arith.constant 96 : i32
    %76 = arith.addi %c96_i32_53, %75 : i32
    %77 = arith.index_cast %76 : i32 to index
    %c0_54 = arith.constant 0 : index
    %78 = vector.load %arg2[%77, %c0_54] : memref<128x32xf32, #tpu.memory_space<vmem>>, vector<1x32xf32>
    %c3_55 = arith.constant 3 : index
    %c96_56 = arith.constant 96 : index
    %79 = vector.load %arg3[%c3_55, %c96_56] : memref<8x128xf32, #tpu.memory_space<vmem>>, vector<1x32xf32>
    tpu.vector_store %arg3[%c3_55, %c96_56], %78 {strides = array<i32>} : memref<8x128xf32, #tpu.memory_space<vmem>>, vector<1x32xf32>,
    %c16 = arith.constant 16 : index
    %80 = memref.load %arg1[%c16] : memref<32xi32, #tpu.memory_space<smem>>
    %c0_i32_57 = arith.constant 0 : i32
    %81 = arith.addi %c0_i32_57, %80 : i32
    %82 = arith.index_cast %81 : i32 to index
    %c0_58 = arith.constant 0 : index
    %83 = vector.load %arg2[%82, %c0_58] : memref<128x32xf32, #tpu.memory_space<vmem>>, vector<1x32xf32>
    %c4_59 = arith.constant 4 : index
    %c0_60 = arith.constant 0 : index
    %84 = vector.load %arg3[%c4_59, %c0_60] : memref<8x128xf32, #tpu.memory_space<vmem>>, vector<1x32xf32>
    tpu.vector_store %arg3[%c4_59, %c0_60], %83 {strides = array<i32>} : memref<8x128xf32, #tpu.memory_space<vmem>>, vector<1x32xf32>,
    %c17 = arith.constant 17 : index
    %85 = memref.load %arg1[%c17] : memref<32xi32, #tpu.memory_space<smem>>
    %c32_i32_61 = arith.constant 32 : i32
    %86 = arith.addi %c32_i32_61, %85 : i32
    %87 = arith.index_cast %86 : i32 to index
    %c0_62 = arith.constant 0 : index
    %88 = vector.load %arg2[%87, %c0_62] : memref<128x32xf32, #tpu.memory_space<vmem>>, vector<1x32xf32>
    %c4_63 = arith.constant 4 : index
    %c32_64 = arith.constant 32 : index
    %89 = vector.load %arg3[%c4_63, %c32_64] : memref<8x128xf32, #tpu.memory_space<vmem>>, vector<1x32xf32>
    tpu.vector_store %arg3[%c4_63, %c32_64], %88 {strides = array<i32>} : memref<8x128xf32, #tpu.memory_space<vmem>>, vector<1x32xf32>,
    %c18 = arith.constant 18 : index
    %90 = memref.load %arg1[%c18] : memref<32xi32, #tpu.memory_space<smem>>
    %c64_i32_65 = arith.constant 64 : i32
    %91 = arith.addi %c64_i32_65, %90 : i32
    %92 = arith.index_cast %91 : i32 to index
    %c0_66 = arith.constant 0 : index
    %93 = vector.load %arg2[%92, %c0_66] : memref<128x32xf32, #tpu.memory_space<vmem>>, vector<1x32xf32>
    %c4_67 = arith.constant 4 : index
    %c64_68 = arith.constant 64 : index
    %94 = vector.load %arg3[%c4_67, %c64_68] : memref<8x128xf32, #tpu.memory_space<vmem>>, vector<1x32xf32>
    tpu.vector_store %arg3[%c4_67, %c64_68], %93 {strides = array<i32>} : memref<8x128xf32, #tpu.memory_space<vmem>>, vector<1x32xf32>,
    %c19 = arith.constant 19 : index
    %95 = memref.load %arg1[%c19] : memref<32xi32, #tpu.memory_space<smem>>
    %c96_i32_69 = arith.constant 96 : i32
    %96 = arith.addi %c96_i32_69, %95 : i32
    %97 = arith.index_cast %96 : i32 to index
    %c0_70 = arith.constant 0 : index
    %98 = vector.load %arg2[%97, %c0_70] : memref<128x32xf32, #tpu.memory_space<vmem>>, vector<1x32xf32>
    %c4_71 = arith.constant 4 : index
    %c96_72 = arith.constant 96 : index
    %99 = vector.load %arg3[%c4_71, %c96_72] : memref<8x128xf32, #tpu.memory_space<vmem>>, vector<1x32xf32>
    tpu.vector_store %arg3[%c4_71, %c96_72], %98 {strides = array<i32>} : memref<8x128xf32, #tpu.memory_space<vmem>>, vector<1x32xf32>,
    %c20 = arith.constant 20 : index
    %100 = memref.load %arg1[%c20] : memref<32xi32, #tpu.memory_space<smem>>
    %c0_i32_73 = arith.constant 0 : i32
    %101 = arith.addi %c0_i32_73, %100 : i32
    %102 = arith.index_cast %101 : i32 to index
    %c0_74 = arith.constant 0 : index
    %103 = vector.load %arg2[%102, %c0_74] : memref<128x32xf32, #tpu.memory_space<vmem>>, vector<1x32xf32>
    %c5_75 = arith.constant 5 : index
    %c0_76 = arith.constant 0 : index
    %104 = vector.load %arg3[%c5_75, %c0_76] : memref<8x128xf32, #tpu.memory_space<vmem>>, vector<1x32xf32>
    tpu.vector_store %arg3[%c5_75, %c0_76], %103 {strides = array<i32>} : memref<8x128xf32, #tpu.memory_space<vmem>>, vector<1x32xf32>,
    %c21 = arith.constant 21 : index
    %105 = memref.load %arg1[%c21] : memref<32xi32, #tpu.memory_space<smem>>
    %c32_i32_77 = arith.constant 32 : i32
    %106 = arith.addi %c32_i32_77, %105 : i32
    %107 = arith.index_cast %106 : i32 to index
    %c0_78 = arith.constant 0 : index
    %108 = vector.load %arg2[%107, %c0_78] : memref<128x32xf32, #tpu.memory_space<vmem>>, vector<1x32xf32>
    %c5_79 = arith.constant 5 : index
    %c32_80 = arith.constant 32 : index
    %109 = vector.load %arg3[%c5_79, %c32_80] : memref<8x128xf32, #tpu.memory_space<vmem>>, vector<1x32xf32>
    tpu.vector_store %arg3[%c5_79, %c32_80], %108 {strides = array<i32>} : memref<8x128xf32, #tpu.memory_space<vmem>>, vector<1x32xf32>,
    %c22 = arith.constant 22 : index
    %110 = memref.load %arg1[%c22] : memref<32xi32, #tpu.memory_space<smem>>
    %c64_i32_81 = arith.constant 64 : i32
    %111 = arith.addi %c64_i32_81, %110 : i32
    %112 = arith.index_cast %111 : i32 to index
    %c0_82 = arith.constant 0 : index
    %113 = vector.load %arg2[%112, %c0_82] : memref<128x32xf32, #tpu.memory_space<vmem>>, vector<1x32xf32>
    %c5_83 = arith.constant 5 : index
    %c64_84 = arith.constant 64 : index
    %114 = vector.load %arg3[%c5_83, %c64_84] : memref<8x128xf32, #tpu.memory_space<vmem>>, vector<1x32xf32>
    tpu.vector_store %arg3[%c5_83, %c64_84], %113 {strides = array<i32>} : memref<8x128xf32, #tpu.memory_space<vmem>>, vector<1x32xf32>,
    %c23 = arith.constant 23 : index
    %115 = memref.load %arg1[%c23] : memref<32xi32, #tpu.memory_space<smem>>
    %c96_i32_85 = arith.constant 96 : i32
    %116 = arith.addi %c96_i32_85, %115 : i32
    %117 = arith.index_cast %116 : i32 to index
    %c0_86 = arith.constant 0 : index
    %118 = vector.load %arg2[%117, %c0_86] : memref<128x32xf32, #tpu.memory_space<vmem>>, vector<1x32xf32>
    %c5_87 = arith.constant 5 : index
    %c96_88 = arith.constant 96 : index
    %119 = vector.load %arg3[%c5_87, %c96_88] : memref<8x128xf32, #tpu.memory_space<vmem>>, vector<1x32xf32>
    tpu.vector_store %arg3[%c5_87, %c96_88], %118 {strides = array<i32>} : memref<8x128xf32, #tpu.memory_space<vmem>>, vector<1x32xf32>,
    %c24 = arith.constant 24 : index
    %120 = memref.load %arg1[%c24] : memref<32xi32, #tpu.memory_space<smem>>
    %c0_i32_89 = arith.constant 0 : i32
    %121 = arith.addi %c0_i32_89, %120 : i32
    %122 = arith.index_cast %121 : i32 to index
    %c0_90 = arith.constant 0 : index
    %123 = vector.load %arg2[%122, %c0_90] : memref<128x32xf32, #tpu.memory_space<vmem>>, vector<1x32xf32>
    %c6_91 = arith.constant 6 : index
    %c0_92 = arith.constant 0 : index
    %124 = vector.load %arg3[%c6_91, %c0_92] : memref<8x128xf32, #tpu.memory_space<vmem>>, vector<1x32xf32>
    tpu.vector_store %arg3[%c6_91, %c0_92], %123 {strides = array<i32>} : memref<8x128xf32, #tpu.memory_space<vmem>>, vector<1x32xf32>,
    %c25 = arith.constant 25 : index
    %125 = memref.load %arg1[%c25] : memref<32xi32, #tpu.memory_space<smem>>
    %c32_i32_93 = arith.constant 32 : i32
    %126 = arith.addi %c32_i32_93, %125 : i32
    %127 = arith.index_cast %126 : i32 to index
    %c0_94 = arith.constant 0 : index
    %128 = vector.load %arg2[%127, %c0_94] : memref<128x32xf32, #tpu.memory_space<vmem>>, vector<1x32xf32>
    %c6_95 = arith.constant 6 : index
    %c32_96 = arith.constant 32 : index
    %129 = vector.load %arg3[%c6_95, %c32_96] : memref<8x128xf32, #tpu.memory_space<vmem>>, vector<1x32xf32>
    tpu.vector_store %arg3[%c6_95, %c32_96], %128 {strides = array<i32>} : memref<8x128xf32, #tpu.memory_space<vmem>>, vector<1x32xf32>,
    %c26 = arith.constant 26 : index
    %130 = memref.load %arg1[%c26] : memref<32xi32, #tpu.memory_space<smem>>
    %c64_i32_97 = arith.constant 64 : i32
    %131 = arith.addi %c64_i32_97, %130 : i32
    %132 = arith.index_cast %131 : i32 to index
    %c0_98 = arith.constant 0 : index
    %133 = vector.load %arg2[%132, %c0_98] : memref<128x32xf32, #tpu.memory_space<vmem>>, vector<1x32xf32>
    %c6_99 = arith.constant 6 : index
    %c64_100 = arith.constant 64 : index
    %134 = vector.load %arg3[%c6_99, %c64_100] : memref<8x128xf32, #tpu.memory_space<vmem>>, vector<1x32xf32>
    tpu.vector_store %arg3[%c6_99, %c64_100], %133 {strides = array<i32>} : memref<8x128xf32, #tpu.memory_space<vmem>>, vector<1x32xf32>,
    %c27 = arith.constant 27 : index
    %135 = memref.load %arg1[%c27] : memref<32xi32, #tpu.memory_space<smem>>
    %c96_i32_101 = arith.constant 96 : i32
    %136 = arith.addi %c96_i32_101, %135 : i32
    %137 = arith.index_cast %136 : i32 to index
    %c0_102 = arith.constant 0 : index
    %138 = vector.load %arg2[%137, %c0_102] : memref<128x32xf32, #tpu.memory_space<vmem>>, vector<1x32xf32>
    %c6_103 = arith.constant 6 : index
    %c96_104 = arith.constant 96 : index
    %139 = vector.load %arg3[%c6_103, %c96_104] : memref<8x128xf32, #tpu.memory_space<vmem>>, vector<1x32xf32>
    tpu.vector_store %arg3[%c6_103, %c96_104], %138 {strides = array<i32>} : memref<8x128xf32, #tpu.memory_space<vmem>>, vector<1x32xf32>,
    %c28 = arith.constant 28 : index
    %140 = memref.load %arg1[%c28] : memref<32xi32, #tpu.memory_space<smem>>
    %c0_i32_105 = arith.constant 0 : i32
    %141 = arith.addi %c0_i32_105, %140 : i32
    %142 = arith.index_cast %141 : i32 to index
    %c0_106 = arith.constant 0 : index
    %143 = vector.load %arg2[%142, %c0_106] : memref<128x32xf32, #tpu.memory_space<vmem>>, vector<1x32xf32>
    %c7_107 = arith.constant 7 : index
    %c0_108 = arith.constant 0 : index
    %144 = vector.load %arg3[%c7_107, %c0_108] : memref<8x128xf32, #tpu.memory_space<vmem>>, vector<1x32xf32>
    tpu.vector_store %arg3[%c7_107, %c0_108], %143 {strides = array<i32>} : memref<8x128xf32, #tpu.memory_space<vmem>>, vector<1x32xf32>,
    %c29 = arith.constant 29 : index
    %145 = memref.load %arg1[%c29] : memref<32xi32, #tpu.memory_space<smem>>
    %c32_i32_109 = arith.constant 32 : i32
    %146 = arith.addi %c32_i32_109, %145 : i32
    %147 = arith.index_cast %146 : i32 to index
    %c0_110 = arith.constant 0 : index
    %148 = vector.load %arg2[%147, %c0_110] : memref<128x32xf32, #tpu.memory_space<vmem>>, vector<1x32xf32>
    %c7_111 = arith.constant 7 : index
    %c32_112 = arith.constant 32 : index
    %149 = vector.load %arg3[%c7_111, %c32_112] : memref<8x128xf32, #tpu.memory_space<vmem>>, vector<1x32xf32>
    tpu.vector_store %arg3[%c7_111, %c32_112], %148 {strides = array<i32>} : memref<8x128xf32, #tpu.memory_space<vmem>>, vector<1x32xf32>,
    %c30 = arith.constant 30 : index
    %150 = memref.load %arg1[%c30] : memref<32xi32, #tpu.memory_space<smem>>
    %c64_i32_113 = arith.constant 64 : i32
    %151 = arith.addi %c64_i32_113, %150 : i32
    %152 = arith.index_cast %151 : i32 to index
    %c0_114 = arith.constant 0 : index
    %153 = vector.load %arg2[%152, %c0_114] : memref<128x32xf32, #tpu.memory_space<vmem>>, vector<1x32xf32>
    %c7_115 = arith.constant 7 : index
    %c64_116 = arith.constant 64 : index
    %154 = vector.load %arg3[%c7_115, %c64_116] : memref<8x128xf32, #tpu.memory_space<vmem>>, vector<1x32xf32>
    tpu.vector_store %arg3[%c7_115, %c64_116], %153 {strides = array<i32>} : memref<8x128xf32, #tpu.memory_space<vmem>>, vector<1x32xf32>,
    %c31 = arith.constant 31 : index
    %155 = memref.load %arg1[%c31] : memref<32xi32, #tpu.memory_space<smem>>
    %c96_i32_117 = arith.constant 96 : i32
    %156 = arith.addi %c96_i32_117, %155 : i32
    %157 = arith.index_cast %156 : i32 to index
    %c0_118 = arith.constant 0 : index
    %158 = vector.load %arg2[%157, %c0_118] : memref<128x32xf32, #tpu.memory_space<vmem>>, vector<1x32xf32>
    %c7_119 = arith.constant 7 : index
    %c96_120 = arith.constant 96 : index
    %159 = vector.load %arg3[%c7_119, %c96_120] : memref<8x128xf32, #tpu.memory_space<vmem>>, vector<1x32xf32>
    tpu.vector_store %arg3[%c7_119, %c96_120], %158 {strides = array<i32>} : memref<8x128xf32, #tpu.memory_space<vmem>>, vector<1x32xf32>,
    return
  }
  func.func @transform_0(%arg0: i32, %arg1: memref<32xi32, #tpu.memory_space<smem>>) -> (i32, i32) {
    %c0_i32 = arith.constant 0 : i32
    %c0_i32_0 = arith.constant 0 : i32
    %c0_i32_1 = arith.constant 0 : i32
    return %c0_i32, %c0_i32_0 : i32, i32
  }
  func.func @transform_1(%arg0: i32, %arg1: memref<32xi32, #tpu.memory_space<smem>>) -> (i32, i32) {
    %c0_i32 = arith.constant 0 : i32
    %c0_i32_0 = arith.constant 0 : i32
    %c0_i32_1 = arith.constant 0 : i32
    return %c0_i32, %c0_i32_0 : i32, i32
  }
}

</mosaic_0001>

<bundles_post_ra>
// kernel: tpu_custom_call.1
= control target key start
LH: loop header
LB: loop body
LE: loop exit
PB: predicated region body
PF: predicated region fallthrough
CT: control target
= control target key end

     0   :  { %s649_s0 = inlined_call_operand.vmem [shape: s32[32], index: 0, kind: input, shape index: {}]   ;;  %s650_s1 = inlined_call_operand.vmem [shape: f32[128,32], index: 1, kind: input, shape index: {}]   ;;  %s651_s2 = inlined_call_operand.hbm [shape: f32[8,128], index: 2, kind: output, shape index: {}]  }
   0x1   :  { %s7_s11 = sshll.u32 %s649_s0, 4  ;;  %s8_s11 = int_to_ptr.vmem [resolvable:$true] %s7_s11 }
   0x2   :  { %s398_s12 = scalar_lea.vmem %s8_s11, 16  ;;  %p403_p1 = scmp.lt.s32.totalorder %s8_s11, %s8_s11 }
   0x3   :  { %p399_p0 = scmp.ne.s32.totalorder %s8_s11, %s398_s12  ;;  %p404_p2 = scmp.lt.s32.totalorder %s398_s12, %s398_s12 }
   0x5   :  { %p405_p3 = por %p404_p2, %p403_p1 }
   0x7   :  { %p406_p4 = pnand %p405_p3, %p399_p0 }
   0x9   :  { %409 = shalt.err (!%p406_p4)  }
   0xa   :  { %s434_s13 = smov [#allocation3]  }
   0xb   :  { %10 = dma.vmem_to_smem %s8_s11, 16, %s434_s13, [#allocation2] }
   0xc   :  { %430 = dma.done.wait [#allocation2], 16 }
   0xd   :  { %431 = vsyncadd [#allocation2], 4294967280 }
   0xe   :  { %12 = sfence }
   0xf   :  { %s352_s14 = sld [smem:[#allocation3 + $0x9]] }
  0x10   :  { %s338_s15 = sld [smem:[#allocation3 + $0x1]] }
  0x11   :  { %13 = vsyncpa [#allocation5], 0  ;;  %s359_s16 = sld [smem:[#allocation3 + $0xd]]  ;;  %s435_s27 = smov 32   ;;  %vm19_vm0 = vcmask 253952   ;;  %vm29_vm1 = vcmask 516352  }
  0x12   :  { %s345_s17 = sld [smem:[#allocation3 + $0x5]]  ;;  %vm39_vm2 = vcmask 778752   ;;  %vm49_vm3 = vcmask 1041152  }
  0x13   :  { %s373_s18 = sld [smem:[#allocation3 + $0x15]] }
  0x14   :  { %s366_s0 = sld [smem:[#allocation3 + $0x11]] }
  0x15   :  { %s297_s21 = scalar_lea.vmem %s650_s1, %s352_s14  ;;  %s387_s22 = sld [smem:[#allocation3 + $0x1d]] }
  0x16   :  { %v353_v0 = vld [vmem:[%s297_s21 + $0x20] sm:$0x1]  ;;  %s283_s25 = scalar_lea.vmem %s650_s1, %s338_s15  ;;  %s380_s26 = sld [smem:[#allocation3 + $0x19]] }
  0x17   :  { %91 = vrot.lane.b32.xlu1 %v353_v0, %s435_s27  ;;  %v339_v1 = vld [vmem:[%s283_s25 + $0x20] sm:$0x1]  ;;  %s304_s30 = scalar_lea.vmem %s650_s1, %s359_s16  ;;  %s347_s9 = sld [smem:[#allocation3 + $0x6]] }
  0x18   :  { %26 = vrot.lane.b32.xlu0 %v339_v1, %s435_s27  ;;  %v360_v2 = vld [vmem:[%s304_s30 + $0x20] sm:$0x1]  ;;  %s290_s5 = scalar_lea.vmem %s650_s1, %s345_s17  ;;  %s340_s13 = sld [smem:[#allocation3 + $0x2]] }
  0x19   :  { %v346_v3 = vld [vmem:[%s290_s5 + $0x20] sm:$0x1]  ;;  %s318_s8 = scalar_lea.vmem %s650_s1, %s373_s18  ;;  %s361_s17 = sld [smem:[#allocation3 + $0xe]] }
  0x1a   :  { %s311_s12 = scalar_lea.vmem %s650_s1, %s366_s0  ;;  %v374_v4 = vld [vmem:[%s318_s8 + $0x20] sm:$0x1]  ;;  %s354_s21 = sld [smem:[#allocation3 + $0xa]] }
  0x1b   :  { %122 = vrot.lane.b32.xlu1 %v360_v2, %s435_s27  ;;  %v367_v5 = vld [vmem:[%s311_s12 + $0x20] sm:$0x1]  ;;  %s332_s16 = scalar_lea.vmem %s650_s1, %s387_s22  ;;  %s486_s0 = sld [smem:[#allocation3 + $0x16]] }
  0x1c   :  { %60 = vrot.lane.b32.xlu0 %v346_v3, %s435_s27  ;;  %s325_s18 = scalar_lea.vmem %s650_s1, %s380_s26  ;;  %v388_v6 = vld [vmem:[%s332_s16 + $0x20] sm:$0x1]  ;;  %s489_s23 = sld [smem:[#allocation3 + $0x12]] }
  0x1d   :  { %v381_v7 = vld [vmem:[%s325_s18 + $0x20] sm:$0x1]  ;;  %s292_s22 = scalar_lea.vmem %s650_s1, %s347_s9  ;;  %s494_s28 = sld [smem:[#allocation3 + $0x1e]] }
  0x1e   :  { %s285_s26 = scalar_lea.vmem %s650_s1, %s340_s13  ;;  %s499_s3 = sld [smem:[#allocation3 + $0x1a]]  ;;  %v348_v8 = vld [vmem:[%s292_s22 + $0x40] sm:$0x1] }
  0x1f   :  { %184 = vrot.lane.b32.xlu1 %v374_v4, %s435_s27  ;;  %s502_s4 = sld [smem:[#allocation3 + $0x7]]  ;;  %v341_v9 = vld [vmem:[%s285_s26 + $0x40] sm:$0x1]  ;;  %s306_s8 = scalar_lea.vmem %s650_s1, %s361_s17 }
  0x20   :  { %153 = vrot.lane.b32.xlu0 %v367_v5, %s435_s27  ;;  %s505_s5 = sld [smem:[#allocation3 + $0x3]]  ;;  %s299_s12 = scalar_lea.vmem %s650_s1, %s354_s21  ;;  %v362_v10 = vld [vmem:[%s306_s8 + $0x40] sm:$0x1] }
  0x21   :  { %s510_s9 = sld [smem:[#allocation3 + $0xf]]  ;;  %s436_s14 = smov 64   ;;  %v355_v11 = vld [vmem:[%s299_s12 + $0x40] sm:$0x1] }
  0x22   :  { %s515_s13 = sld [smem:[#allocation3 + $0xb]]  ;;  %s320_s19 = scalar_lea.vmem %s650_s1, %s486_s0 }
  0x23   :  { %246 = vrot.lane.b32.xlu1 %v388_v6, %s435_s27  ;;  %s16_s15 = sld [smem:[#allocation3]]  ;;  %s313_s21 = scalar_lea.vmem %s650_s1, %s489_s23  ;;  %v376_v12 = vld [vmem:[%s320_s19 + $0x40] sm:$0x1] }
  0x24   :  { %215 = vrot.lane.b32.xlu0 %v381_v7, %s435_s27  ;;  %s351_s27 = sld [smem:[#allocation3 + $0x8]]  ;;  %s334_s30 = scalar_lea.vmem %s650_s1, %s494_s28  ;;  %v369_v13 = vld [vmem:[%s313_s21 + $0x40] sm:$0x1] }
  0x25   :  { %s358_s20 = sld [smem:[#allocation3 + $0xc]]  ;;  %s327_s7 = scalar_lea.vmem %s650_s1, %s499_s3  ;;  %v390_v16 = vld [vmem:[%s334_s30 + $0x40] sm:$0x1] }
  0x26   :  { %s527_s25 = sld [smem:[#allocation3 + $0x4]]  ;;  %v383_v18 = vld [vmem:[%s327_s7 + $0x40] sm:$0x1]  ;;  %s294_s23 = scalar_lea.vmem %s650_s1, %s502_s4 }
  0x27   :  { %69 = vrot.lane.b32.xlu1 %v348_v8, %s436_s14  ;;  %s534_s26 = sld [smem:[#allocation3 + $0x14]]  ;;  %s287_s16 = scalar_lea.vmem %s650_s1, %s505_s5  ;;  %v350_v22 = vld [vmem:[%s294_s23 + $0x60] sm:$0x1] }
  0x28   :  { %36 = vrot.lane.b32.xlu0 %v341_v9, %s436_s14  ;;  %s541_s8 = sld [smem:[#allocation3 + $0x10]]  ;;  %v343_v24 = vld [vmem:[%s287_s16 + $0x60] sm:$0x1]  ;;  %s308_s22 = scalar_lea.vmem %s650_s1, %s510_s9 }
  0x29   :  { %s546_s12 = sld [smem:[#allocation3 + $0x1c]]  ;;  %s17_s17 = scalar_lea.vmem %s650_s1, %s16_s15  ;;  %v364_v26 = vld [vmem:[%s308_s22 + $0x60] sm:$0x1] }
  0x2a   :  { %s83_s11 = scalar_lea.vmem %s650_s1, %s351_s27  ;;  %s551_s19 = sld [smem:[#allocation3 + $0x18]]  ;;  %v18_v15 = vld [vmem:[%s17_s17] sm:$0x1] }
  0x2b   :  { %131 = vrot.lane.b32.xlu1 %v362_v10, %s436_s14  ;;  %v84_v14 = vld [vmem:[%s83_s11] sm:$0x1]  ;;  %s554_s3 = sld [smem:[#allocation3 + $0x17]]  ;;  %s114_s24 = scalar_lea.vmem %s650_s1, %s358_s20  ;;  %20 = vst.msk [vmem:[#allocation4] sm:$0x1] %vm19_vm0, %v18_v15 }
  0x2c   :  { %100 = vrot.lane.b32.xlu0 %v355_v11, %s436_s14  ;;  %85 = vst.msk [vmem:[#allocation4 + $0x2] sm:$0x1] %vm19_vm0, %v84_v14  ;;  %s561_s15 = sld [smem:[#allocation3 + $0x13]]  ;;  %v115_v17 = vld [vmem:[%s114_s24] sm:$0x1]  ;;  %s52_s29 = scalar_lea.vmem %s650_s1, %s527_s25 }
  0x2d   :  { %116 = vst.msk [vmem:[#allocation4 + $0x3] sm:$0x1] %vm19_vm0, %v115_v17  ;;  %v53_v19 = vld [vmem:[%s52_s29] sm:$0x1]  ;;  %s176_s10 = scalar_lea.vmem %s650_s1, %s534_s26  ;;  %s391_s29 = sld [smem:[#allocation3 + $0x1f]] }
  0x2e   :  { %54 = vst.msk [vmem:[#allocation4 + $0x1] sm:$0x1] %vm19_vm0, %v53_v19  ;;  %v177_v20 = vld [vmem:[%s176_s10] sm:$0x1]  ;;  %s145_s4 = scalar_lea.vmem %s650_s1, %s541_s8  ;;  %s301_s6 = scalar_lea.vmem %s650_s1, %s515_s13 }
  0x2f   :  { %193 = vrot.lane.b32.xlu1 %v376_v12, %s436_s14  ;;  %178 = vst.msk [vmem:[#allocation4 + $0x5] sm:$0x1] %vm19_vm0, %v177_v20  ;;  %v146_v21 = vld [vmem:[%s145_s4] sm:$0x1]  ;;  %s238_s26 = scalar_lea.vmem %s650_s1, %s546_s12  ;;  %s384_s0 = sld [smem:[#allocation3 + $0x1b]] }
  0x30   :  { %162 = vrot.lane.b32.xlu0 %v369_v13, %s436_s14  ;;  %147 = vst.msk [vmem:[#allocation4 + $0x4] sm:$0x1] %vm19_vm0, %v146_v21  ;;  %v239_v23 = vld [vmem:[%s238_s26] sm:$0x1]  ;;  %s207_s8 = scalar_lea.vmem %s650_s1, %s551_s19  ;;  %s437_s23 = smov 96  }
  0x31   :  { %240 = vst.msk [vmem:[#allocation4 + $0x7] sm:$0x1] %vm19_vm0, %v239_v23  ;;  %v208_v25 = vld [vmem:[%s207_s8] sm:$0x1]  ;;  %s322_s9 = scalar_lea.vmem %s650_s1, %s554_s3 }
  0x32   :  { %209 = vst.msk [vmem:[#allocation4 + $0x6] sm:$0x1] %vm19_vm0, %v208_v25  ;;  %v357_v27 = vld [vmem:[%s301_s6 + $0x60] sm:$0x1]  ;;  %s315_s11 = scalar_lea.vmem %s650_s1, %s561_s15 }
  0x33   :  { %255 = vrot.lane.b32.xlu1 %v390_v16, %s436_s14  ;;  %v378_v28 = vld [vmem:[%s322_s9 + $0x60] sm:$0x1]  ;;  %s336_s16 = scalar_lea.vmem %s650_s1, %s391_s29 }
  0x34   :  { %224 = vrot.lane.b32.xlu0 %v383_v18, %s436_s14  ;;  %v371_v29 = vld [vmem:[%s315_s11 + $0x60] sm:$0x1] }
  0x35   :  { %s329_s4 = scalar_lea.vmem %s650_s1, %s384_s0  ;;  %v392_v30 = vld [vmem:[%s336_s16 + $0x60] sm:$0x1]  ;;  %s438_s1 = smov [#allocation4]  }
  0x36   :  { %v385_v31 = vld [vmem:[%s329_s4 + $0x60] sm:$0x1]  ;;  %s274_s3 = sshll.u32 %s438_s1, 4  ;;  %s275_s3 = int_to_ptr.vmem [resolvable:$true] %s274_s3 }
  0x37   :  { %78 = vrot.lane.b32.xlu1 %v350_v22, %s437_s23  ;;  %s410_s15 = scalar_lea.vmem %s275_s3, 128  ;;  %p415_p6 = scmp.lt.s32.totalorder %s275_s3, %s275_s3 }
  0x38   :  { %46 = vrot.lane.b32.xlu0 %v343_v24, %s437_s23  ;;  %p411_p5 = scmp.ne.s32.totalorder %s275_s3, %s410_s15  ;;  %p416_p7 = scmp.lt.s32.totalorder %s410_s15, %s410_s15 }
  0x3a   :  { %p417_p8 = por %p416_p7, %p415_p6 }
  0x3b   :  { %140 = vrot.lane.b32.xlu1 %v364_v26, %s437_s23 }
  0x3c   :  { %109 = vrot.lane.b32.xlu0 %v357_v27, %s437_s23  ;;  %p418_p9 = pnand %p417_p8, %p411_p5 }
  0x3f   :  { %202 = vrot.lane.b32.xlu1 %v378_v28, %s437_s23 }
  0x40   :  { %171 = vrot.lane.b32.xlu0 %v371_v29, %s437_s23 }
  0x43   :  { %264 = vrot.lane.b32.xlu1 %v392_v30, %s437_s23 }
  0x44   :  { %233 = vrot.lane.b32.xlu0 %v385_v31, %s437_s23 }
  0x89   :  { %v92_v32 = vpop.permute.xlu1 %91 }
  0x8a   :  { %94 = vst.msk [vmem:[#allocation4 + $0x2] sm:$0x1] %vm29_vm1, %v92_v32  ;;  %v27_v33 = vpop.permute.xlu0 %26 }
  0x8b   :  { %30 = vst.msk [vmem:[#allocation4] sm:$0x1] %vm29_vm1, %v27_v33 }
  0x8d   :  { %v123_v34 = vpop.permute.xlu1 %122 }
  0x8e   :  { %125 = vst.msk [vmem:[#allocation4 + $0x3] sm:$0x1] %vm29_vm1, %v123_v34  ;;  %v61_v35 = vpop.permute.xlu0 %60 }
  0x8f   :  { %63 = vst.msk [vmem:[#allocation4 + $0x1] sm:$0x1] %vm29_vm1, %v61_v35 }
  0x91   :  { %v185_v36 = vpop.permute.xlu1 %184 }
  0x92   :  { %187 = vst.msk [vmem:[#allocation4 + $0x5] sm:$0x1] %vm29_vm1, %v185_v36  ;;  %v154_v37 = vpop.permute.xlu0 %153 }
  0x93   :  { %156 = vst.msk [vmem:[#allocation4 + $0x4] sm:$0x1] %vm29_vm1, %v154_v37 }
  0x95   :  { %v247_v38 = vpop.permute.xlu1 %246 }
  0x96   :  { %249 = vst.msk [vmem:[#allocation4 + $0x7] sm:$0x1] %vm29_vm1, %v247_v38  ;;  %v216_v39 = vpop.permute.xlu0 %215 }
  0x97   :  { %218 = vst.msk [vmem:[#allocation4 + $0x6] sm:$0x1] %vm29_vm1, %v216_v39 }
  0x99   :  { %v70_v40 = vpop.permute.xlu1 %69 }
  0x9a   :  { %72 = vst.msk [vmem:[#allocation4 + $0x1] sm:$0x1] %vm39_vm2, %v70_v40  ;;  %v37_v41 = vpop.permute.xlu0 %36 }
  0x9b   :  { %40 = vst.msk [vmem:[#allocation4] sm:$0x1] %vm39_vm2, %v37_v41 }
  0x9d   :  { %v132_v42 = vpop.permute.xlu1 %131 }
  0x9e   :  { %134 = vst.msk [vmem:[#allocation4 + $0x3] sm:$0x1] %vm39_vm2, %v132_v42  ;;  %v101_v43 = vpop.permute.xlu0 %100 }
  0x9f   :  { %103 = vst.msk [vmem:[#allocation4 + $0x2] sm:$0x1] %vm39_vm2, %v101_v43 }
  0xa1   :  { %v194_v44 = vpop.permute.xlu1 %193 }
  0xa2   :  { %196 = vst.msk [vmem:[#allocation4 + $0x5] sm:$0x1] %vm39_vm2, %v194_v44  ;;  %v163_v45 = vpop.permute.xlu0 %162 }
  0xa3   :  { %165 = vst.msk [vmem:[#allocation4 + $0x4] sm:$0x1] %vm39_vm2, %v163_v45 }
  0xa5   :  { %v256_v46 = vpop.permute.xlu1 %255 }
  0xa6   :  { %258 = vst.msk [vmem:[#allocation4 + $0x7] sm:$0x1] %vm39_vm2, %v256_v46  ;;  %v225_v47 = vpop.permute.xlu0 %224 }
  0xa7   :  { %227 = vst.msk [vmem:[#allocation4 + $0x6] sm:$0x1] %vm39_vm2, %v225_v47 }
  0xa9   :  { %v79_v48 = vpop.permute.xlu1 %78 }
  0xaa   :  { %81 = vst.msk [vmem:[#allocation4 + $0x1] sm:$0x1] %vm49_vm3, %v79_v48  ;;  %v47_v49 = vpop.permute.xlu0 %46 }
  0xab   :  { %50 = vst.msk [vmem:[#allocation4] sm:$0x1] %vm49_vm3, %v47_v49 }
  0xad   :  { %v141_v50 = vpop.permute.xlu1 %140 }
  0xae   :  { %143 = vst.msk [vmem:[#allocation4 + $0x3] sm:$0x1] %vm49_vm3, %v141_v50  ;;  %v110_v51 = vpop.permute.xlu0 %109 }
  0xaf   :  { %112 = vst.msk [vmem:[#allocation4 + $0x2] sm:$0x1] %vm49_vm3, %v110_v51 }
  0xb1   :  { %v203_v52 = vpop.permute.xlu1 %202 }
  0xb2   :  { %205 = vst.msk [vmem:[#allocation4 + $0x5] sm:$0x1] %vm49_vm3, %v203_v52  ;;  %v172_v53 = vpop.permute.xlu0 %171 }
  0xb3   :  { %174 = vst.msk [vmem:[#allocation4 + $0x4] sm:$0x1] %vm49_vm3, %v172_v53 }
  0xb5   :  { %v265_v54 = vpop.permute.xlu1 %264 }
  0xb6   :  { %267 = vst.msk [vmem:[#allocation4 + $0x7] sm:$0x1] %vm49_vm3, %v265_v54  ;;  %v234_v55 = vpop.permute.xlu0 %233 }
  0xb7   :  { %236 = vst.msk [vmem:[#allocation4 + $0x6] sm:$0x1] %vm49_vm3, %v234_v55 }
  0xb8   :  { %421 = shalt.err (!%p418_p9)
}
  0xb9   :  { %277 = dma.vmem_to_hbm [thread:$0]  %s275_s3, 128, %s651_s2, [#allocation5]  }
  0xba   :  { %432 = dma.done.wait [#allocation5], 128  }
  0xbb   :  { %433 = vsyncadd [#allocation5], 4294967168 }
  0xbc   :  { %281 = vsyncpa [#allocation5], 1 }

</bundles_post_ra>
